<compile_context>
chip_gen: v5e
topology: v5e:2x2
jax: 0.10.0
libtpu: 0.0.40
codegen_flags: <defaults>
</compile_context>

<pallas_src>
import functools

import jax
import jax.numpy as jnp
from jax.experimental import pallas as pl
from jax.experimental.pallas import tpu as pltpu


def _round_up(a: int, m: int) -> int:
    return -(-a // m) * m


def _make_linear_kernel(has_bias: bool, acc_in_out: bool, compute_dtype):
    """Build the kernel body for a given static configuration."""

    def kernel(*refs):
        if has_bias:
            x_ref, w_ref, b_ref = refs[0], refs[1], refs[2]
            rest = refs[3:]
        else:
            x_ref, w_ref = refs[0], refs[1]
            b_ref = None
            rest = refs[2:]

        if acc_in_out:
            (o_ref,) = rest
            acc_ref = o_ref            # f32 output block is resident across k
        else:
            o_ref, acc_ref = rest      # narrow output: accumulate in f32 scratch

        k = pl.program_id(2)

        @pl.when(k == 0)
        def _init():
            acc_ref[...] = jnp.zeros_like(acc_ref)

        x = x_ref[...]
        w = w_ref[...]
        if compute_dtype is not None:
            x = x.astype(compute_dtype)
            w = w.astype(compute_dtype)

        # Weight block is (tn, tk) in its native (out, in) layout; contract the
        # K axes directly (MXU handles the transposed operand) so the wrapper
        # never materializes weight.T in HBM.
        acc_ref[...] += jax.lax.dot_general(
            x,
            w,
            dimension_numbers=(((1,), (1,)), ((), ())),
            preferred_element_type=jnp.float32,
        ).astype(acc_ref.dtype)

        if has_bias or not acc_in_out:
            @pl.when(k == pl.num_programs(2) - 1)
            def _finalize():
                res = acc_ref[...]
                if has_bias:
                    res = res + b_ref[...].astype(res.dtype)
                o_ref[...] = res.astype(o_ref.dtype)

    return kernel


def spike_linear_relu_forward(
    x,
    weight,
    bias=None,
    *,
    tm: int = 256,
    tn: int = 512,
    tk: int = 512,
    compute_dtype=None,
):
    """Pallas implementation of SpikeLinear_ReLU.forward (non-spike path).

    x:      (..., K)  — leading dims (batch, spiking time steps, ...) are
                         flattened into M so the MXU sees one big matmul.
    weight: (N, K)     — PyTorch nn.Linear convention (out_features, in_features).
    bias:   (N,) or None
    returns (..., N), same dtype as x.

    Note: the StraightThrough path of the module is the identity, so no ReLU
    is applied here (matches the PyTorch forward exactly).
    """
    orig_shape = x.shape
    K = orig_shape[-1]
    x2 = x.reshape(-1, K)
    M = x2.shape[0]
    N, K2 = weight.shape
    assert K == K2, f"in_features mismatch: {K} vs {K2}"

    out_dtype = x.dtype
    has_bias = bias is not None

    # --- tile selection: big by default, clamp to the (aligned) problem ------
    tm = max(8, min(tm, _round_up(M, 8)))
    tn = max(128, min(tn, _round_up(N, 128)))
    tk = max(128, min(tk, _round_up(K, 128)))

    # v7x megacore: give a "parallel" grid axis >= 2 blocks when it is free to
    # do so, so the work can be sharded across both TensorCores.
    if (_round_up(M, tm) // tm == 1
            and _round_up(N, tn) // tn == 1
            and tn % 256 == 0):
        tn //= 2

    Mp, Np, Kp = _round_up(M, tm), _round_up(N, tn), _round_up(K, tk)

    # --- zero-pad to tile multiples (zeros don't change the result) ----------
    if (Mp, Kp) != (M, K):
        x2 = jnp.pad(x2, ((0, Mp - M), (0, Kp - K)))
    w = weight
    if (Np, Kp) != (N, K):
        w = jnp.pad(w, ((0, Np - N), (0, Kp - K)))
    if has_bias:
        b = bias if Np == N else jnp.pad(bias, (0, Np - N))
        b2d = b.reshape(1, Np)

    # f32 outputs: accumulate directly in the resident output block.
    acc_in_out = out_dtype == jnp.float32

    grid = (Mp // tm, Np // tn, Kp // tk)

    in_specs = [
        pl.BlockSpec((tm, tk), lambda i, j, k: (i, k)),  # x tile
        pl.BlockSpec((tn, tk), lambda i, j, k: (j, k)),  # weight tile (native N,K)
    ]
    inputs = [x2, w]
    if has_bias:
        in_specs.append(pl.BlockSpec((1, tn), lambda i, j, k: (0, j)))
        inputs.append(b2d)

    scratch_shapes = [] if acc_in_out else [pltpu.VMEM((tm, tn), jnp.float32)]

    # VMEM budget: double-buffered inputs + output (+ accumulator), with headroom.
    in_bytes = jnp.dtype(x2.dtype).itemsize
    out_bytes = jnp.dtype(out_dtype).itemsize
    vmem_need = (
        2 * (tm * tk + tn * tk) * in_bytes
        + 2 * tm * tn * out_bytes
        + (0 if acc_in_out else tm * tn * 4)
        + (2 * tn * in_bytes if has_bias else 0)
    )
    vmem_limit = int(min(64 * 1024 * 1024, max(2 * vmem_need, 32 * 1024 * 1024)))

    kernel = _make_linear_kernel(has_bias, acc_in_out, compute_dtype)

    out = pl.pallas_call(
        kernel,
        out_shape=jax.ShapeDtypeStruct((Mp, Np), out_dtype),
        grid_spec=pltpu.PrefetchScalarGridSpec(
            num_scalar_prefetch=0,
            grid=grid,
            in_specs=in_specs,
            out_specs=pl.BlockSpec((tm, tn), lambda i, j, k: (i, j)),
            scratch_shapes=scratch_shapes,
        ),
        compiler_params=pltpu.CompilerParams(
            dimension_semantics=("parallel", "parallel", "arbitrary"),
            vmem_limit_bytes=vmem_limit,
        ),
    )(*inputs)

    out = out[:M, :N]
    return out.reshape(*orig_shape[:-1], N)


if __name__ == "__main__":
    key = jax.random.PRNGKey(0)
    kx, kw, kb, kx2, kw2 = jax.random.split(key, 5)

    # Shapes implied by the module: a Linear layer fed a (batch, in_features) tensor.
    batch, in_features, out_features = 8, 128, 128

    x = jax.random.normal(kx, (batch, in_features), dtype=jnp.float32)
    weight = jax.random.normal(kw, (out_features, in_features), dtype=jnp.float32) * 0.05
    bias = jax.random.normal(kb, (out_features,), dtype=jnp.float32) * 0.1

    out = spike_linear_relu_forward(x, weight, bias)
    out = jax.block_until_ready(out)
    ref = x @ weight.T + bias
    assert out.shape == (batch, out_features)
    assert jnp.allclose(out, ref, atol=1e-4, rtol=1e-4), "mismatch vs reference linear"

    # Non-tile-aligned shapes + bias=None: exercises padding, the bias-free
    # kernel variant, and the >=2-block parallel-axis split.
    M2, K2, N2 = 5, 96, 200
    x2 = jax.random.normal(kx2, (M2, K2), dtype=jnp.float32)
    w2 = jax.random.normal(kw2, (N2, K2), dtype=jnp.float32) * 0.05
    out2 = jax.block_until_ready(spike_linear_relu_forward(x2, w2, None))
    ref2 = x2 @ w2.T
    assert out2.shape == (M2, N2)
    assert jnp.allclose(out2, ref2, atol=1e-4, rtol=1e-4), "mismatch (padded/no-bias)"

    print("KERNEL_OK")
</pallas_src>

<mosaic_0001>
module attributes {stable_mosaic.version = 11 : i64} {
  func.func @kernel(%arg0: i32, %arg1: i32, %arg2: i32, %arg3: memref<8x128xf32, #tpu.memory_space<vmem>>, %arg4: memref<128x128xf32, #tpu.memory_space<vmem>>, %arg5: memref<1x128xf32, #tpu.memory_space<vmem>>, %arg6: memref<8x128xf32, #tpu.memory_space<vmem>>) attributes {dimension_semantics = [#tpu.dimension_semantics<parallel>, #tpu.dimension_semantics<parallel>, #tpu.dimension_semantics<arbitrary>], iteration_bounds = array<i64: 1, 1, 1>, scalar_prefetch = 0 : i64, scratch_operands = 0 : i64, tpu.core_type = #tpu.core_type<tc>, window_params = [{transform_indices = @transform_0, window_bounds = array<i64: 8, 128>}, {transform_indices = @transform_1, window_bounds = array<i64: 128, 128>}, {transform_indices = @transform_2, window_bounds = array<i64: 1, 128>}, {transform_indices = @transform_3, window_bounds = array<i64: 8, 128>}]} {
    %c0_i32 = arith.constant 0 : i32
    %0 = arith.cmpi eq, %arg2, %c0_i32 : i32
    %1 = arith.extui %0 : i1 to i32
    %c0_i32_0 = arith.constant 0 : i32
    %2 = arith.cmpi ne, %1, %c0_i32_0 : i32
    scf.if %2 {
      %cst_10 = arith.constant 0.000000e+00 : f32
      %12 = vector.broadcast %cst_10 : f32 to vector<8x128xf32>
      %c0_11 = arith.constant 0 : index
      %c0_12 = arith.constant 0 : index
      %13 = vector.load %arg6[%c0_11, %c0_12] : memref<8x128xf32, #tpu.memory_space<vmem>>, vector<8x128xf32>
      tpu.vector_store %arg6[%c0_11, %c0_12], %12 {strides = array<i32>} : memref<8x128xf32, #tpu.memory_space<vmem>>, vector<8x128xf32>,
    } else {
    }
    %c0 = arith.constant 0 : index
    %c0_1 = arith.constant 0 : index
    %3 = vector.load %arg3[%c0, %c0_1] : memref<8x128xf32, #tpu.memory_space<vmem>>, vector<8x128xf32>
    %c0_2 = arith.constant 0 : index
    %c0_3 = arith.constant 0 : index
    %4 = vector.load %arg4[%c0_2, %c0_3] : memref<128x128xf32, #tpu.memory_space<vmem>>, vector<128x128xf32>
    %c0_4 = arith.constant 0 : index
    %c0_5 = arith.constant 0 : index
    %5 = vector.load %arg6[%c0_4, %c0_5] : memref<8x128xf32, #tpu.memory_space<vmem>>, vector<8x128xf32>
    %cst = arith.constant dense<0.000000e+00> : vector<8x128xf32>
    %6 = tpu.matmul %3, %4, %cst {dimension_numbers = #tpu.dot_dimension_numbers<[1], [1], [0], [0], [0, 0, 1, 0], [], []>} : vector<8x128xf32>, vector<128x128xf32>, vector<8x128xf32> -> vector<8x128xf32>
    %7 = arith.addf %5, %6 : vector<8x128xf32>
    %c0_6 = arith.constant 0 : index
    %c0_7 = arith.constant 0 : index
    %8 = vector.load %arg6[%c0_6, %c0_7] : memref<8x128xf32, #tpu.memory_space<vmem>>, vector<8x128xf32>
    tpu.vector_store %arg6[%c0_6, %c0_7], %7 {strides = array<i32>} : memref<8x128xf32, #tpu.memory_space<vmem>>, vector<8x128xf32>,
    %c0_i32_8 = arith.constant 0 : i32
    %9 = arith.cmpi eq, %arg2, %c0_i32_8 : i32
    %10 = arith.extui %9 : i1 to i32
    %c0_i32_9 = arith.constant 0 : i32
    %11 = arith.cmpi ne, %10, %c0_i32_9 : i32
    scf.if %11 {
      %c0_10 = arith.constant 0 : index
      %c0_11 = arith.constant 0 : index
      %12 = vector.load %arg6[%c0_10, %c0_11] : memref<8x128xf32, #tpu.memory_space<vmem>>, vector<8x128xf32>
      %c0_12 = arith.constant 0 : index
      %c0_13 = arith.constant 0 : index
      %13 = vector.load %arg5[%c0_12, %c0_13] : memref<1x128xf32, #tpu.memory_space<vmem>>, vector<1x128xf32>
      %14 = vector.broadcast %13 : vector<1x128xf32> to vector<8x128xf32>
      %15 = arith.addf %12, %14 : vector<8x128xf32>
      %c0_14 = arith.constant 0 : index
      %c0_15 = arith.constant 0 : index
      %16 = vector.load %arg6[%c0_14, %c0_15] : memref<8x128xf32, #tpu.memory_space<vmem>>, vector<8x128xf32>
      tpu.vector_store %arg6[%c0_14, %c0_15], %15 {strides = array<i32>} : memref<8x128xf32, #tpu.memory_space<vmem>>, vector<8x128xf32>,
    } else {
    }
    return
  }
  func.func @transform_0(%arg0: i32, %arg1: i32, %arg2: i32) -> (i32, i32) {
    %c0_i32 = arith.constant 0 : i32
    return %arg0, %arg2 : i32, i32
  }
  func.func @transform_1(%arg0: i32, %arg1: i32, %arg2: i32) -> (i32, i32) {
    %c0_i32 = arith.constant 0 : i32
    return %arg1, %arg2 : i32, i32
  }
  func.func @transform_2(%arg0: i32, %arg1: i32, %arg2: i32) -> (i32, i32) {
    %c0_i32 = arith.constant 0 : i32
    %c0_i32_0 = arith.constant 0 : i32
    return %c0_i32, %arg1 : i32, i32
  }
  func.func @transform_3(%arg0: i32, %arg1: i32, %arg2: i32) -> (i32, i32) {
    %c0_i32 = arith.constant 0 : i32
    return %arg0, %arg1 : i32, i32
  }
}

</mosaic_0001>

<bundles_post_ra>
// kernel: tpu_custom_call.1
= control target key start
LH: loop header
LB: loop body
LE: loop exit
PB: predicated region body
PF: predicated region fallthrough
CT: control target
= control target key end

     0   :  { %8 = vsyncpa [#allocation3], 0  ;;  %s240_s0 = inlined_call_operand.hbm [shape: f32[8,128], index: 0, kind: input, shape index: {}]   ;;  %s241_s1 = inlined_call_operand.hbm [shape: f32[128,128], index: 1, kind: input, shape index: {}]   ;;  %s242_s2 = inlined_call_operand.vmem [shape: f32[1,128], index: 2, kind: input, shape index: {}]   ;;  %s243_s3 = inlined_call_operand.hbm [shape: f32[8,128], index: 3, kind: output, shape index: {}]  }
   0x1   :  { %9 = vsyncpa [#allocation6], 0 }
   0x2   :  { %10 = vsyncpa [#allocation4], 0  ;;  %s16_s14 = sshll.u32 %s240_s0, 4  ;;  %s203_s15 = smov [#allocation2]   ;;  %s17_s14 = int_to_ptr.hbm [resolvable:$true] %s16_s14 }
   0x3   :  { %s18_s16 = sshll.u32 %s203_s15, 4  ;;  %s26_s19 = sshll.u32 %s241_s1, 4  ;;  %s19_s16 = int_to_ptr.vmem [resolvable:$true] %s18_s16  ;;  %s27_s19 = int_to_ptr.hbm [resolvable:$true] %s26_s19 }
   0x4   :  { %21 = dma.hbm_to_vmem [thread:$0]  %s17_s14, 128, %s19_s16, [#allocation3]  }
   0x5   :  { %s204_s20 = smov [#allocation5]   ;;  %s205_s22 = smov 128  }
   0x6   :  { %s28_s21 = sshll.u32 %s204_s20, 4  ;;  %s206_s23 = smov 8   ;;  %s29_s21 = int_to_ptr.vmem [resolvable:$true] %s28_s21 }
   0x7   :  { %34 = dma.hbm_to_vmem [thread:$0]  %s27_s19, 2048, %s29_s21, [#allocation6], %s205_s22, %s205_s22, %s206_s23  }
   0x8   :  { %197 = dma.done.wait [#allocation3], 128  }
   0x9   :  { %198 = vsyncadd [#allocation3], 4294967168 }
   0xa   :  { %199 = dma.done.wait [#allocation6], 2048  }
   0xb   :  { %200 = vsyncadd [#allocation6], 4294965248  ;;  %v66_v0 = vld [vmem:[#allocation5 + $0x78] sm:$0xff]  ;;  %v65_v1 = vld [vmem:[#allocation5 + $0x70] sm:$0xff]  ;;  %s207_s24 = smov [#allocation7]   ;;  %s107_s28 = sshll.u32 %s243_s3, 4  ;;  %s108_s28 = int_to_ptr.hbm [resolvable:$true] %s107_s28 }
   0xc   :  { %68 = vmatpush.xpose.msra.mxu0 %v66_v0  ;;  %v64_v2 = vld [vmem:[#allocation5 + $0x68] sm:$0xff]  ;;  %v63_v3 = vld [vmem:[#allocation5 + $0x60] sm:$0xff]  ;;  %v62_v4 = vld [vmem:[#allocation5 + $0x58] sm:$0xff]  ;;  %s105_s25 = sshll.u32 %s207_s24, 4  ;;  %s106_s25 = int_to_ptr.vmem [resolvable:$true] %s105_s25 }
   0xd   :  { %v61_v5 = vld [vmem:[#allocation5 + $0x50] sm:$0xff]  ;;  %v60_v6 = vld [vmem:[#allocation5 + $0x48] sm:$0xff]  ;;  %v59_v7 = vld [vmem:[#allocation5 + $0x40] sm:$0xff] }
   0xe   :  { %v58_v8 = vld [vmem:[#allocation5 + $0x38] sm:$0xff]  ;;  %v57_v9 = vld [vmem:[#allocation5 + $0x30] sm:$0xff]  ;;  %v56_v10 = vld [vmem:[#allocation5 + $0x28] sm:$0xff] }
   0xf   :  { %v55_v11 = vld [vmem:[#allocation5 + $0x20] sm:$0xff]  ;;  %v54_v12 = vld [vmem:[#allocation5 + $0x18] sm:$0xff]  ;;  %v53_v13 = vld [vmem:[#allocation5 + $0x10] sm:$0xff] }
  0x10   :  { %69 = vmatpush.xpose.msra.mxu0 %v65_v1  ;;  %v52_v14 = vld [vmem:[#allocation5 + $0x8] sm:$0xff]  ;;  %v51_v15 = vld [vmem:[#allocation5] sm:$0xff]  ;;  %v50_v16 = vld [vmem:[#allocation2] sm:$0xff] }
  0x11   :  { %v124_v17 = vld [vmem:[%s242_s2] ss:$0 sm:$0xff] }
  0x14   :  { %70 = vmatpush.xpose.msra.mxu0 %v64_v2 }
  0x18   :  { %71 = vmatpush.xpose.msra.mxu0 %v63_v3 }
  0x1c   :  { %72 = vmatpush.xpose.msra.mxu0 %v62_v4 }
  0x20   :  { %73 = vmatpush.xpose.msra.mxu0 %v61_v5 }
  0x24   :  { %74 = vmatpush.xpose.msra.mxu0 %v60_v6 }
  0x28   :  { %75 = vmatpush.xpose.msra.mxu0 %v59_v7 }
  0x2c   :  { %76 = vmatpush.xpose.msra.mxu0 %v58_v8 }
  0x30   :  { %77 = vmatpush.xpose.msra.mxu0 %v57_v9 }
  0x34   :  { %78 = vmatpush.xpose.msra.mxu0 %v56_v10 }
  0x38   :  { %79 = vmatpush.xpose.msra.mxu0 %v55_v11 }
  0x3c   :  { %80 = vmatpush.xpose.msra.mxu0 %v54_v12 }
  0x40   :  { %81 = vmatpush.xpose.msra.mxu0 %v53_v13 }
  0x44   :  { %82 = vmatpush.xpose.msra.mxu0 %v52_v14 }
  0x48   :  { %83 = vmatpush.xpose.msra.mxu0 %v51_v15 }
  0x4b   :  { %84 = vmatmul.f32.vlgmr.msra.gmra.mxu0 %v50_v16 }
  0xc8   :  { %v85_v18 = vpop.f32.mrf.mxu0 }
  0xc9   :  { %v98_v19 = vadd.f32 %v124_v17, %v85_v18 }
  0xcb   :  { %99 = vst [vmem:[#allocation7] sm:$0xff] %v98_v19 }
  0xcc   :  { %110 = dma.vmem_to_hbm [thread:$0]  %s106_s25, 128, %s108_s28, [#allocation4]  }
  0xcd   :  { %201 = dma.done.wait [#allocation4], 128  }
  0xce   :  { %202 = vsyncadd [#allocation4], 4294967168 }
  0xcf   :  { %115 = vsyncpa [#allocation3], 1 }
  0xd0   :  { %116 = vsyncpa [#allocation6], 1 }
  0xd1   :  { %117 = vsyncpa [#allocation4], 1 }

</bundles_post_ra>
